<compile_context>
chip_gen: v6e
topology: v6e:2x2x1
jax: 0.10.0
libtpu: 0.0.40
codegen_flags: <defaults>
</compile_context>

<pallas_src>
import jax
import jax.numpy as jnp
from jax.experimental import pallas as pl
from jax.experimental.pallas import tpu as pltpu


def conv1d_kernel(x_ref, w_ref, o_ref):
    # x_ref: (TB, F, K)  native-layout input tile
    # w_ref: (F, K)      weights, resident in VMEM across grid steps
    # o_ref: (TB, F)
    x = x_ref[...].astype(jnp.float32)               # f32 accumulation
    w = w_ref[...].astype(jnp.float32)
    acc = jnp.sum(x * w[None, :, :], axis=-1)        # K-reduce in-kernel (free slack)
    o_ref[...] = acc.astype(o_ref.dtype)


def _round_up(x, m):
    return ((x + m - 1) // m) * m


def _sublane_multiple(dtype):
    return {4: 8, 2: 16, 1: 32}.get(jnp.dtype(dtype).itemsize, 8)


def _pick_batch_tile(B, F, K, dtype):
    """Size TB from the padded VMEM layout of one (TB, F, K) block:
    K sits on lanes (padded to 128), F on sublanes (padded to 8/16/32)."""
    itemsize = jnp.dtype(dtype).itemsize
    sub = _sublane_multiple(dtype)
    row_bytes = _round_up(F, sub) * _round_up(K, 128) * itemsize
    target_bytes = 8 * 1024 * 1024                   # ~8 MiB per input tile
    tb = max(1, target_bytes // row_bytes)
    if B >= 4 * sub:
        tb = min(tb, pl.cdiv(B, 4))                  # >=4 grid steps (2 per v7x TC)
    if tb >= B:
        return B                                     # single full-batch block
    tb = max(sub, (tb // sub) * sub)                 # sublane-aligned out block
    return min(tb, B)


def convolution1d(x, w, *, batch_tile=None):
    """Forward of Convolutinon1D: out = (x * W).sum(-1).
    x: (B, F, K), w: (F, K) -> (B, F)."""
    B, F, K = x.shape
    assert w.shape == (F, K)

    tb = batch_tile if batch_tile is not None else _pick_batch_tile(B, F, K, x.dtype)
    num_blocks = pl.cdiv(B, tb)                      # no pad; Pallas masks the partial block

    return pl.pallas_call(
        conv1d_kernel,
        out_shape=jax.ShapeDtypeStruct((B, F), x.dtype),
        grid_spec=pltpu.PrefetchScalarGridSpec(
            num_scalar_prefetch=0,
            grid=(num_blocks,),
            in_specs=[
                # native-layout batch tile; (F, K) are full extents (tiling rule OK)
                pl.BlockSpec((tb, F, K), lambda b: (b, 0, 0)),
                # weights: constant index -> resident in VMEM
                pl.BlockSpec((F, K), lambda b: (0, 0)),
            ],
            out_specs=pl.BlockSpec((tb, F), lambda b: (b, 0)),
        ),
        compiler_params=pltpu.CompilerParams(
            dimension_semantics=("parallel",),       # batch tiles are independent
            vmem_limit_bytes=48 << 20,               # headroom for double-buffered tiles
        ),
    )(x, w)


if __name__ == "__main__":
    # Module: Convolutinon1D(in_features=F, kernal_size=K), W ~ U[0,1) of shape (F, K)
    B, F, K = 2, 8, 16

    key = jax.random.PRNGKey(0)
    kx, kw = jax.random.split(key)
    x = jax.random.normal(kx, (B, F, K), dtype=jnp.float32)
    W = jax.random.uniform(kw, (F, K), dtype=jnp.float32)   # mirrors torch.rand(F, K)

    out = jax.block_until_ready(convolution1d(x, W))
    ref = jnp.sum(x * W[None, :, :], axis=-1)
    assert out.shape == (B, F)
    assert jnp.allclose(out, ref, atol=1e-5, rtol=1e-5)

    # Exercise the multi-block grid with a non-divisible (masked) last block:
    # B=20, tb=8 -> grid of 3 steps, last block covers only 4 rows.
    B2 = 20
    x2 = jax.random.normal(jax.random.PRNGKey(1), (B2, F, K), dtype=jnp.float32)
    out2 = jax.block_until_ready(convolution1d(x2, W, batch_tile=8))
    ref2 = jnp.sum(x2 * W[None, :, :], axis=-1)
    assert out2.shape == (B2, F)
    assert jnp.allclose(out2, ref2, atol=1e-5, rtol=1e-5)

    print("KERNEL_OK")
</pallas_src>

<mosaic_0001>
module attributes {stable_mosaic.version = 11 : i64} {
  func.func @conv1d_kernel(%arg0: i32, %arg1: memref<2x8x16xf32, #tpu.memory_space<vmem>>, %arg2: memref<8x16xf32, #tpu.memory_space<vmem>>, %arg3: memref<2x8xf32, #tpu.memory_space<vmem>>) attributes {dimension_semantics = [#tpu.dimension_semantics<parallel>], iteration_bounds = array<i64: 1>, scalar_prefetch = 0 : i64, scratch_operands = 0 : i64, tpu.core_type = #tpu.core_type<tc>, window_params = [{transform_indices = @transform_0, window_bounds = array<i64: 2, 8, 16>}, {pipeline_mode = #tpu.pipeline_mode<synchronous>, transform_indices = @transform_1, window_bounds = array<i64: 8, 16>}, {transform_indices = @transform_2, window_bounds = array<i64: 2, 8>}]} {
    %c0 = arith.constant 0 : index
    %c0_0 = arith.constant 0 : index
    %c0_1 = arith.constant 0 : index
    %0 = vector.load %arg1[%c0, %c0_0, %c0_1] : memref<2x8x16xf32, #tpu.memory_space<vmem>>, vector<2x8x16xf32>
    %c0_2 = arith.constant 0 : index
    %c0_3 = arith.constant 0 : index
    %1 = vector.load %arg2[%c0_2, %c0_3] : memref<8x16xf32, #tpu.memory_space<vmem>>, vector<8x16xf32>
    %2 = vector.shape_cast %1 : vector<8x16xf32> to vector<1x8x16xf32>
    %3 = vector.broadcast %2 : vector<1x8x16xf32> to vector<2x8x16xf32>
    %4 = arith.mulf %0, %3 : vector<2x8x16xf32>
    %cst = arith.constant dense<0.000000e+00> : vector<2x8xf32>
    %5 = vector.multi_reduction <add>, %4, %cst [2] : vector<2x8x16xf32> to vector<2x8xf32>
    %c0_4 = arith.constant 0 : index
    %c0_5 = arith.constant 0 : index
    %6 = vector.load %arg3[%c0_4, %c0_5] : memref<2x8xf32, #tpu.memory_space<vmem>>, vector<2x8xf32>
    tpu.vector_store %arg3[%c0_4, %c0_5], %5 {strides = array<i32>} : memref<2x8xf32, #tpu.memory_space<vmem>>, vector<2x8xf32>,
    return
  }
  func.func @transform_0(%arg0: i32) -> (i32, i32, i32) {
    %c0_i32 = arith.constant 0 : i32
    %c0_i32_0 = arith.constant 0 : i32
    %c0_i32_1 = arith.constant 0 : i32
    return %arg0, %c0_i32, %c0_i32_0 : i32, i32, i32
  }
  func.func @transform_1(%arg0: i32) -> (i32, i32) {
    %c0_i32 = arith.constant 0 : i32
    %c0_i32_0 = arith.constant 0 : i32
    %c0_i32_1 = arith.constant 0 : i32
    return %c0_i32, %c0_i32_0 : i32, i32
  }
  func.func @transform_2(%arg0: i32) -> (i32, i32) {
    %c0_i32 = arith.constant 0 : i32
    %c0_i32_0 = arith.constant 0 : i32
    return %arg0, %c0_i32 : i32, i32
  }
}

</mosaic_0001>

<bundles_post_ra>
// kernel: tpu_custom_call.1
= control target key start
LH: loop header
LB: loop body
LE: loop exit
PB: predicated region body
PF: predicated region fallthrough
CT: control target
= control target key end

     0   :  { %7 = vsyncpa [#allocation3], 0  ;;  %s183_s0 = inlined_call_operand.hbm [shape: f32[2,8,16], index: 0, kind: input, shape index: {}]   ;;  %s184_s1 = inlined_call_operand.hbm [shape: f32[8,16], index: 1, kind: input, shape index: {}]   ;;  %s185_s2 = inlined_call_operand.hbm [shape: f32[2,8], index: 2, kind: output, shape index: {}]  }
   0x1   :  { %8 = vsyncpa [#allocation6], 0 }
   0x2   :  { %9 = vsyncpa [#allocation4], 0  ;;  %s154_s9 = smov [#allocation2]  }
   0x3   :  { %s15_s10 = sshll.u32 %s154_s9, 4  ;;  %s16_s10 = int_to_ptr.vmem [resolvable:$true] %s15_s10 }
   0x4   :  { %s96_s11 = scalar_lea.vmem %s16_s10, 256  ;;  %p101_p1 = scmp.lt.s32.totalorder %s16_s10, %s16_s10 }
   0x5   :  { %p97_p0 = scmp.ne.s32.totalorder %s16_s10, %s96_s11  ;;  %p102_p2 = scmp.lt.s32.totalorder %s96_s11, %s96_s11 }
   0x7   :  { %p103_p3 = por %p102_p2, %p101_p1 }
   0x9   :  { %p104_p4 = pnand %p103_p3, %p97_p0 }
   0xb   :  { %107 = shalt.err (!%p104_p4)
}
   0xc   :  { %s155_s12 = smov 128   ;;  %s156_s13 = smov 8  }
   0xd   :  { %21 = dma.hbm_to_vmem [thread:$0]  %s183_s0, 256, %s16_s10, [#allocation3], %s155_s12, %s155_s12, %s156_s13  }
   0xe   :  { %s157_s16 = smov [#allocation5]  }
   0xf   :  { %s28_s17 = sshll.u32 %s157_s16, 4  ;;  %s29_s17 = int_to_ptr.vmem [resolvable:$true] %s28_s17 }
  0x10   :  { %s116_s18 = scalar_lea.vmem %s29_s17, 128  ;;  %p121_p6 = scmp.lt.s32.totalorder %s29_s17, %s29_s17 }
  0x11   :  { %p117_p5 = scmp.ne.s32.totalorder %s29_s17, %s116_s18  ;;  %p122_p7 = scmp.lt.s32.totalorder %s116_s18, %s116_s18 }
  0x13   :  { %p123_p8 = por %p122_p7, %p121_p6 }
  0x15   :  { %p124_p9 = pnand %p123_p8, %p117_p5 }
  0x17   :  { %127 = shalt.err (!%p124_p9)
}
  0x18   :  { %31 = dma.hbm_to_vmem [thread:$0]  %s184_s1, 128, %s29_s17, [#allocation6]  }
  0x19   :  { %148 = dma.done.wait [#allocation3], 256  }
  0x1a   :  { %149 = vsyncadd [#allocation3], 4294967040 }
  0x1b   :  { %150 = dma.done.wait [#allocation6], 128  }
  0x1c   :  { %151 = vsyncadd [#allocation6], 4294967168  ;;  %v38_v0 = vld [vmem:[#allocation2] sm:$0xff]  ;;  %v40_v1 = vld [vmem:[#allocation5] sm:$0xff]  ;;  %vm43_vm0 = vcmask 130048   ;;  %v52_v7 = vlaneseq  ;;  %s158_s0 = smov [#allocation7]  }
  0x1d   :  { %v39_v2 = vld [vmem:[#allocation2 + $0x8] sm:$0xff]  ;;  %v41_v3 = vmul.f32 %v40_v1, %v38_v0  ;;  %s73_s1 = sshll.u32 %s158_s0, 4  ;;  %vm62_vm1 = vcmask 1041409   ;;  %vm65_vm2 = vcmask 58368   ;;  %s74_s1 = int_to_ptr.vmem [resolvable:$true] %s73_s1 }
  0x1e   :  { %v42_v4 = vmul.f32 %v40_v1, %v39_v2  ;;  %v53_v8 = vand.u32 127, %v52_v7  ;;  %v55_v9 = vshrl.u32 %v52_v7, 7  ;;  %s128_s21 = scalar_lea.vmem %s74_s1, 32  ;;  %p133_p11 = scmp.lt.s32.totalorder %s74_s1, %s74_s1 }
  0x1f   :  { %v44_v5 = vsel %vm43_vm0, %v41_v3, 0.0  ;;  %p129_p10 = scmp.ne.s32.totalorder %s74_s1, %s128_s21  ;;  %p134_p12 = scmp.lt.s32.totalorder %s128_s21, %s128_s21 }
  0x20   :  { %45 = vadd.xlane.f32.xlu0 %v44_v5  ;;  %v47_v6 = vsel %vm43_vm0, %v42_v4, 0.0  ;;  %v56_v11 = vsub.s32 %v53_v8, %v55_v9 }
  0x21   :  { %p135_p13 = por %p134_p12, %p133_p11 }
  0x23   :  { %p136_p0 = pnand %p135_p13, %p129_p10 }
  0x24   :  { %48 = vadd.xlane.f32.xlu0 %v47_v6 }
  0xa9   :  { %v46_v10 = vpop.xlane.xlu0 %45 }
  0xaa   :  { %v57_v13 = vrot.slane %v46_v10, %v56_v11 }
  0xad   :  { %v49_v12 = vpop.xlane.xlu0 %48 }
  0xae   :  { %v61_v14 = vrot.slane %v49_v12, %v56_v11 }
  0xb0   :  { %v63_v15 = vsel %vm62_vm1, %v61_v14, %v57_v13 }
  0xb1   :  { %66 = vst.msk [vmem:[#allocation7] sm:$0x3] %vm65_vm2, %v63_v15 }
  0xb2   :  { %139 = shalt.err (!%p136_p0)
}
  0xb3   :  { %76 = dma.vmem_to_hbm [thread:$0]  %s74_s1, 32, %s185_s2, [#allocation4]  }
  0xb4   :  { %152 = dma.done.wait [#allocation4], 32  }
  0xb5   :  { %153 = vsyncadd [#allocation4], 4294967264 }
  0xb6   :  { %80 = vsyncpa [#allocation3], 1 }
  0xb7   :  { %81 = vsyncpa [#allocation6], 1 }
  0xb8   :  { %82 = vsyncpa [#allocation4], 1 }

</bundles_post_ra>
